<compile_context>
chip_gen: v7x
topology: tpu7x:2x2x1
jax: 0.10.0
libtpu: 0.0.40
codegen_flags: <defaults>
</compile_context>

<pallas_src>
import jax
import jax.numpy as jnp
from jax.experimental import pallas as pl
from jax.experimental.pallas import tpu as pltpu


def dkvmn_kernel(q_ref, mk_t_ref, cv_ref, mv_ref,
                 ew_ref, eb_ref, aw_ref, ab_ref,
                 w_out_ref, rc_out_ref, newmem_out_ref):
    # ---- attention (key head addressing) ----
    q = q_ref[...]                                          # (TB, Dk)  f32
    s = jnp.dot(q, mk_t_ref[...],
                preferred_element_type=jnp.float32)         # (TB, M)
    s = s - jnp.max(s, axis=1, keepdims=True)
    e = jnp.exp(s)
    corr_w = e / jnp.sum(e, axis=1, keepdims=True)          # exact softmax
    w_out_ref[...] = corr_w.astype(w_out_ref.dtype)

    # ---- write-head signals (erase / add projections) ----
    cv = cv_ref[...]                                        # (TB, Dv)
    erase = jax.nn.sigmoid(
        jnp.dot(cv, ew_ref[...], preferred_element_type=jnp.float32) + eb_ref[...])
    add = jnp.tanh(
        jnp.dot(cv, aw_ref[...], preferred_element_type=jnp.float32) + ab_ref[...])
    erase = erase[:, None, :]                               # (TB, 1, Dv)
    add = add[:, None, :]                                   # (TB, 1, Dv)

    # ---- read + write, sharing the broadcast multiply ----
    mv = mv_ref[...].astype(jnp.float32)                    # (TB, M, Dv) streamed dtype -> f32
    ww = corr_w[:, :, None]                                 # (TB, M, 1)
    wmv = ww * mv                                           # (TB, M, Dv)
    rc_out_ref[...] = jnp.sum(wmv, axis=1).astype(rc_out_ref.dtype)      # (TB, Dv)
    # new_mem = mv * (1 - erase*ww) + add*ww  ==  mv - erase*wmv + add*ww
    newmem_out_ref[...] = (mv - erase * wmv + add * ww).astype(newmem_out_ref.dtype)


def _pick_batch_tile(B, M, Dv, stream_itemsize):
    """Pick a batch tile TB (multiple of 8, dividing B) such that:
      * the grid has >= 2 steps (>= 4 when B allows) so DMA/compute overlap and
        megacore sharding stay available,
      * the double-buffered streamed slabs (mv in + new_mem out) plus ~3 f32
        (TB, M, Dv) elementwise temporaries fit a conservative 24 MiB budget
        (safe even on v7x's 64 MiB physical VMEM; v5e/v6e have headroom to spare).
    """
    if B % 8 != 0:
        return B                                    # tiny/ragged batch: single block

    def footprint(tb):
        streamed = 2 * (tb * M * Dv * stream_itemsize) * 2     # mv in + new_mem out, x2 buffers
        temps = 3 * tb * M * Dv * 4                            # f32 in-kernel temporaries
        return streamed + temps

    budget = 24 * 1024 * 1024
    min_steps = 4 if B >= 32 else 2
    tb = 8
    while (B % (tb * 2) == 0) and (B // (tb * 2) >= min_steps) \
            and footprint(tb * 2) <= budget:
        tb *= 2
    return tb


def dkvmn_forward(q_key, memory_key, control_value, memory_value,
                  erase_w_t, erase_b, add_w_t, add_b):
    """erase_w_t / add_w_t are pre-transposed (Dv, Dv) so the kernel computes x @ W
    (matching PyTorch's x @ W.T); biases are (1, Dv).
    memory_value may be bf16 (recommended) or f32; new_memory is returned in the
    same dtype. corr_w / read_content are returned in f32."""
    B, Dk = q_key.shape
    M, _ = memory_key.shape
    Dv = control_value.shape[1]
    mv_dtype = memory_value.dtype

    # Pre-transpose the resident key memory so the MXU RHS is already (K, N).
    mk_t = jnp.transpose(memory_key)                          # (Dk, M)

    TB = _pick_batch_tile(B, M, Dv, jnp.dtype(mv_dtype).itemsize)
    grid = (B // TB,)

    in_specs = [
        pl.BlockSpec((TB, Dk), lambda b: (b, 0)),             # q_key
        pl.BlockSpec((Dk, M), lambda b: (0, 0)),              # memory_key^T (resident)
        pl.BlockSpec((TB, Dv), lambda b: (b, 0)),             # control_value
        pl.BlockSpec((TB, M, Dv), lambda b: (b, 0, 0)),       # memory_value (streamed)
        pl.BlockSpec((Dv, Dv), lambda b: (0, 0)),             # erase weight (resident)
        pl.BlockSpec((1, Dv), lambda b: (0, 0)),              # erase bias   (resident)
        pl.BlockSpec((Dv, Dv), lambda b: (0, 0)),             # add weight   (resident)
        pl.BlockSpec((1, Dv), lambda b: (0, 0)),              # add bias     (resident)
    ]
    out_specs = (
        pl.BlockSpec((TB, M), lambda b: (b, 0)),              # correlation weight
        pl.BlockSpec((TB, Dv), lambda b: (b, 0)),             # read content
        pl.BlockSpec((TB, M, Dv), lambda b: (b, 0, 0)),       # new memory value
    )
    out_shapes = (
        jax.ShapeDtypeStruct((B, M), jnp.float32),
        jax.ShapeDtypeStruct((B, Dv), jnp.float32),
        jax.ShapeDtypeStruct((B, M, Dv), mv_dtype),
    )

    fn = pl.pallas_call(
        dkvmn_kernel,
        out_shape=out_shapes,
        grid_spec=pltpu.PrefetchScalarGridSpec(
            num_scalar_prefetch=0,
            grid=grid,
            in_specs=in_specs,
            out_specs=out_specs,
        ),
        # new_memory overwrites memory_value in place (input index 3 -> output index 2).
        input_output_aliases={3: 2},
        compiler_params=pltpu.CompilerParams(
            dimension_semantics=("parallel",),       # shard batch tiles across TCs (v7x)
            vmem_limit_bytes=48 * 1024 * 1024,       # conservative; under v7x 64 MiB physical
        ),
    )
    return fn(q_key, mk_t, control_value, memory_value,
              erase_w_t, erase_b, add_w_t, add_b)


def _reference(q_key, memory_key, control_value, memory_value,
               erase_w_t, erase_b, add_w_t, add_b):
    hp = jax.lax.Precision.HIGHEST
    mv = memory_value.astype(jnp.float32)
    s = jnp.dot(q_key, memory_key.T, precision=hp)
    w = jax.nn.softmax(s, axis=1)
    rc = jnp.sum(w[:, :, None] * mv, axis=1)
    erase = jax.nn.sigmoid(jnp.dot(control_value, erase_w_t, precision=hp) + erase_b)
    add = jnp.tanh(jnp.dot(control_value, add_w_t, precision=hp) + add_b)
    new_mem = mv * (1.0 - erase[:, None, :] * w[:, :, None]) \
        + add[:, None, :] * w[:, :, None]
    return w, rc, new_mem


if __name__ == "__main__":
    # Small DKVMN-consistent shapes: batch 16, memory_size 32, key dim 64, value dim 128.
    B, M, Dk, Dv = 16, 32, 64, 128

    key = jax.random.PRNGKey(0)
    ks = jax.random.split(key, 6)

    q_key = jax.random.normal(ks[0], (B, Dk), jnp.float32)
    memory_key = jax.random.normal(ks[1], (M, Dk), jnp.float32)        # init_memory_key
    control_value = jax.random.normal(ks[2], (B, Dv), jnp.float32)
    # Stream the big recurrent state as bf16 (compute stays f32 inside the kernel).
    memory_value = jax.random.normal(ks[3], (B, M, Dv), jnp.float32).astype(jnp.bfloat16)

    # nn.Linear(Dv, Dv): weight (out,in) kaiming_normal_ (std=sqrt(2/fan_in)), bias 0.
    kaiming_std = (2.0 / Dv) ** 0.5
    erase_w = jax.random.normal(ks[4], (Dv, Dv), jnp.float32) * kaiming_std
    add_w = jax.random.normal(ks[5], (Dv, Dv), jnp.float32) * kaiming_std
    erase_b = jnp.zeros((1, Dv), jnp.float32)
    add_b = jnp.zeros((1, Dv), jnp.float32)
    erase_w_t = erase_w.T        # pre-transpose so kernel computes x @ W (== PyTorch x @ W.T)
    add_w_t = add_w.T

    # Reference computed first (the kernel aliases memory_value into new_memory).
    w_ref, rc_ref, nm_ref = _reference(q_key, memory_key, control_value, memory_value,
                                       erase_w_t, erase_b, add_w_t, add_b)

    fwd = jax.jit(dkvmn_forward)
    w_o, rc_o, nm_o = jax.block_until_ready(
        fwd(q_key, memory_key, control_value, memory_value,
            erase_w_t, erase_b, add_w_t, add_b))

    assert w_o.shape == (B, M) and w_o.dtype == jnp.float32
    assert rc_o.shape == (B, Dv) and rc_o.dtype == jnp.float32
    assert nm_o.shape == (B, M, Dv) and nm_o.dtype == memory_value.dtype

    assert jnp.allclose(w_o, w_ref, atol=3e-3, rtol=3e-3), "corr_w mismatch"
    assert jnp.allclose(rc_o, rc_ref, atol=5e-3, rtol=5e-3), "read_content mismatch"
    nm_ref_q = nm_ref.astype(nm_o.dtype).astype(jnp.float32)   # account for bf16 output store
    assert jnp.allclose(nm_o.astype(jnp.float32), nm_ref_q, atol=2e-2, rtol=2e-2), \
        "new_memory mismatch"

    print("KERNEL_OK")
</pallas_src>

<mosaic_0001>
module attributes {stable_mosaic.version = 11 : i64} {
  func.func @dkvmn_kernel(%arg0: i32, %arg1: memref<8x64xf32, #tpu.memory_space<vmem>>, %arg2: memref<64x32xf32, #tpu.memory_space<vmem>>, %arg3: memref<8x128xf32, #tpu.memory_space<vmem>>, %arg4: memref<8x32x128xbf16, #tpu.memory_space<vmem>>, %arg5: memref<128x128xf32, #tpu.memory_space<vmem>>, %arg6: memref<1x128xf32, #tpu.memory_space<vmem>>, %arg7: memref<128x128xf32, #tpu.memory_space<vmem>>, %arg8: memref<1x128xf32, #tpu.memory_space<vmem>>, %arg9: memref<8x32xf32, #tpu.memory_space<vmem>>, %arg10: memref<8x128xf32, #tpu.memory_space<vmem>>, %arg11: memref<8x32x128xbf16, #tpu.memory_space<vmem>>) attributes {dimension_semantics = [#tpu.dimension_semantics<parallel>], iteration_bounds = array<i64: 2>, scalar_prefetch = 0 : i64, scratch_operands = 0 : i64, tpu.core_type = #tpu.core_type<tc>, window_params = [{transform_indices = @transform_0, window_bounds = array<i64: 8, 64>}, {pipeline_mode = #tpu.pipeline_mode<synchronous>, transform_indices = @transform_1, window_bounds = array<i64: 64, 32>}, {transform_indices = @transform_2, window_bounds = array<i64: 8, 128>}, {transform_indices = @transform_3, window_bounds = array<i64: 8, 32, 128>}, {pipeline_mode = #tpu.pipeline_mode<synchronous>, transform_indices = @transform_4, window_bounds = array<i64: 128, 128>}, {pipeline_mode = #tpu.pipeline_mode<synchronous>, transform_indices = @transform_5, window_bounds = array<i64: 1, 128>}, {pipeline_mode = #tpu.pipeline_mode<synchronous>, transform_indices = @transform_6, window_bounds = array<i64: 128, 128>}, {pipeline_mode = #tpu.pipeline_mode<synchronous>, transform_indices = @transform_7, window_bounds = array<i64: 1, 128>}, {transform_indices = @transform_8, window_bounds = array<i64: 8, 32>}, {transform_indices = @transform_9, window_bounds = array<i64: 8, 128>}, {transform_indices = @transform_10, window_bounds = array<i64: 8, 32, 128>}]} {
    %c0 = arith.constant 0 : index
    %c0_0 = arith.constant 0 : index
    %0 = vector.load %arg1[%c0, %c0_0] : memref<8x64xf32, #tpu.memory_space<vmem>>, vector<8x64xf32>
    %c0_1 = arith.constant 0 : index
    %c0_2 = arith.constant 0 : index
    %1 = vector.load %arg2[%c0_1, %c0_2] : memref<64x32xf32, #tpu.memory_space<vmem>>, vector<64x32xf32>
    %cst = arith.constant dense<0.000000e+00> : vector<8x32xf32>
    %2 = tpu.matmul %0, %1, %cst {dimension_numbers = #tpu.dot_dimension_numbers<[1], [0], [0], [1], [0, 0, 1, 1], [], []>} : vector<8x64xf32>, vector<64x32xf32>, vector<8x32xf32> -> vector<8x32xf32>
    %cst_3 = arith.constant dense<0xFF800000> : vector<8xf32>
    %3 = vector.multi_reduction <maximumf>, %2, %cst_3 [1] : vector<8x32xf32> to vector<8xf32>
    %4 = vector.shape_cast %3 : vector<8xf32> to vector<8x1xf32>
    %5 = vector.broadcast %4 : vector<8x1xf32> to vector<8x32xf32>
    %6 = arith.subf %2, %5 : vector<8x32xf32>
    %7 = math.exp %6 : vector<8x32xf32>
    %cst_4 = arith.constant dense<0.000000e+00> : vector<8xf32>
    %8 = vector.multi_reduction <add>, %7, %cst_4 [1] : vector<8x32xf32> to vector<8xf32>
    %9 = vector.shape_cast %8 : vector<8xf32> to vector<8x1xf32>
    %10 = vector.broadcast %9 : vector<8x1xf32> to vector<8x32xf32>
    %11 = arith.divf %7, %10 : vector<8x32xf32>
    %c0_5 = arith.constant 0 : index
    %c0_6 = arith.constant 0 : index
    %12 = vector.load %arg9[%c0_5, %c0_6] : memref<8x32xf32, #tpu.memory_space<vmem>>, vector<8x32xf32>
    tpu.vector_store %arg9[%c0_5, %c0_6], %11 {strides = array<i32>} : memref<8x32xf32, #tpu.memory_space<vmem>>, vector<8x32xf32>,
    %c0_7 = arith.constant 0 : index
    %c0_8 = arith.constant 0 : index
    %13 = vector.load %arg3[%c0_7, %c0_8] : memref<8x128xf32, #tpu.memory_space<vmem>>, vector<8x128xf32>
    %c0_9 = arith.constant 0 : index
    %c0_10 = arith.constant 0 : index
    %14 = vector.load %arg5[%c0_9, %c0_10] : memref<128x128xf32, #tpu.memory_space<vmem>>, vector<128x128xf32>
    %cst_11 = arith.constant dense<0.000000e+00> : vector<8x128xf32>
    %15 = tpu.matmul %13, %14, %cst_11 {dimension_numbers = #tpu.dot_dimension_numbers<[1], [0], [0], [1], [0, 0, 1, 1], [], []>} : vector<8x128xf32>, vector<128x128xf32>, vector<8x128xf32> -> vector<8x128xf32>
    %c0_12 = arith.constant 0 : index
    %c0_13 = arith.constant 0 : index
    %16 = vector.load %arg6[%c0_12, %c0_13] : memref<1x128xf32, #tpu.memory_space<vmem>>, vector<1x128xf32>
    %17 = vector.broadcast %16 : vector<1x128xf32> to vector<8x128xf32>
    %18 = arith.addf %15, %17 : vector<8x128xf32>
    %19 = arith.negf %18 : vector<8x128xf32>
    %20 = math.exp %19 : vector<8x128xf32>
    %cst_14 = arith.constant 1.000000e+00 : f32
    %21 = vector.broadcast %cst_14 : f32 to vector<8x128xf32>
    %22 = arith.addf %21, %20 : vector<8x128xf32>
    %23 = arith.divf %21, %22 : vector<8x128xf32>
    %c0_15 = arith.constant 0 : index
    %c0_16 = arith.constant 0 : index
    %24 = vector.load %arg7[%c0_15, %c0_16] : memref<128x128xf32, #tpu.memory_space<vmem>>, vector<128x128xf32>
    %cst_17 = arith.constant dense<0.000000e+00> : vector<8x128xf32>
    %25 = tpu.matmul %13, %24, %cst_17 {dimension_numbers = #tpu.dot_dimension_numbers<[1], [0], [0], [1], [0, 0, 1, 1], [], []>} : vector<8x128xf32>, vector<128x128xf32>, vector<8x128xf32> -> vector<8x128xf32>
    %c0_18 = arith.constant 0 : index
    %c0_19 = arith.constant 0 : index
    %26 = vector.load %arg8[%c0_18, %c0_19] : memref<1x128xf32, #tpu.memory_space<vmem>>, vector<1x128xf32>
    %27 = vector.broadcast %26 : vector<1x128xf32> to vector<8x128xf32>
    %28 = arith.addf %25, %27 : vector<8x128xf32>
    %29 = math.tanh %28 : vector<8x128xf32>
    %30 = vector.shape_cast %23 : vector<8x128xf32> to vector<8x1x128xf32>
    %31 = vector.shape_cast %29 : vector<8x128xf32> to vector<8x1x128xf32>
    %c0_20 = arith.constant 0 : index
    %c0_21 = arith.constant 0 : index
    %c0_22 = arith.constant 0 : index
    %32 = vector.load %arg4[%c0_20, %c0_21, %c0_22] : memref<8x32x128xbf16, #tpu.memory_space<vmem>>, vector<8x32x128xbf16>
    %33 = arith.extf %32 : vector<8x32x128xbf16> to vector<8x32x128xf32>
    %34 = vector.shape_cast %11 : vector<8x32xf32> to vector<8x32x1xf32>
    %35 = vector.broadcast %34 : vector<8x32x1xf32> to vector<8x32x128xf32>
    %36 = arith.mulf %35, %33 : vector<8x32x128xf32>
    %cst_23 = arith.constant dense<0.000000e+00> : vector<8x128xf32>
    %37 = vector.multi_reduction <add>, %36, %cst_23 [1] : vector<8x32x128xf32> to vector<8x128xf32>
    %c0_24 = arith.constant 0 : index
    %c0_25 = arith.constant 0 : index
    %38 = vector.load %arg10[%c0_24, %c0_25] : memref<8x128xf32, #tpu.memory_space<vmem>>, vector<8x128xf32>
    tpu.vector_store %arg10[%c0_24, %c0_25], %37 {strides = array<i32>} : memref<8x128xf32, #tpu.memory_space<vmem>>, vector<8x128xf32>,
    %39 = vector.broadcast %30 : vector<8x1x128xf32> to vector<8x32x128xf32>
    %40 = arith.mulf %39, %36 : vector<8x32x128xf32>
    %41 = arith.subf %33, %40 : vector<8x32x128xf32>
    %42 = vector.broadcast %31 : vector<8x1x128xf32> to vector<8x32x128xf32>
    %43 = vector.broadcast %34 : vector<8x32x1xf32> to vector<8x32x128xf32>
    %44 = arith.mulf %42, %43 : vector<8x32x128xf32>
    %45 = arith.addf %41, %44 : vector<8x32x128xf32>
    %46 = arith.truncf %45 : vector<8x32x128xf32> to vector<8x32x128xbf16>
    %c0_26 = arith.constant 0 : index
    %c0_27 = arith.constant 0 : index
    %c0_28 = arith.constant 0 : index
    %47 = vector.load %arg11[%c0_26, %c0_27, %c0_28] : memref<8x32x128xbf16, #tpu.memory_space<vmem>>, vector<8x32x128xbf16>
    tpu.vector_store %arg11[%c0_26, %c0_27, %c0_28], %46 {strides = array<i32>} : memref<8x32x128xbf16, #tpu.memory_space<vmem>>, vector<8x32x128xbf16>,
    return
  }
  func.func @transform_0(%arg0: i32) -> (i32, i32) {
    %c0_i32 = arith.constant 0 : i32
    %c0_i32_0 = arith.constant 0 : i32
    return %arg0, %c0_i32 : i32, i32
  }
  func.func @transform_1(%arg0: i32) -> (i32, i32) {
    %c0_i32 = arith.constant 0 : i32
    %c0_i32_0 = arith.constant 0 : i32
    %c0_i32_1 = arith.constant 0 : i32
    return %c0_i32, %c0_i32_0 : i32, i32
  }
  func.func @transform_2(%arg0: i32) -> (i32, i32) {
    %c0_i32 = arith.constant 0 : i32
    %c0_i32_0 = arith.constant 0 : i32
    return %arg0, %c0_i32 : i32, i32
  }
  func.func @transform_3(%arg0: i32) -> (i32, i32, i32) {
    %c0_i32 = arith.constant 0 : i32
    %c0_i32_0 = arith.constant 0 : i32
    %c0_i32_1 = arith.constant 0 : i32
    return %arg0, %c0_i32, %c0_i32_0 : i32, i32, i32
  }
  func.func @transform_4(%arg0: i32) -> (i32, i32) {
    %c0_i32 = arith.constant 0 : i32
    %c0_i32_0 = arith.constant 0 : i32
    %c0_i32_1 = arith.constant 0 : i32
    return %c0_i32, %c0_i32_0 : i32, i32
  }
  func.func @transform_5(%arg0: i32) -> (i32, i32) {
    %c0_i32 = arith.constant 0 : i32
    %c0_i32_0 = arith.constant 0 : i32
    %c0_i32_1 = arith.constant 0 : i32
    return %c0_i32, %c0_i32_0 : i32, i32
  }
  func.func @transform_6(%arg0: i32) -> (i32, i32) {
    %c0_i32 = arith.constant 0 : i32
    %c0_i32_0 = arith.constant 0 : i32
    %c0_i32_1 = arith.constant 0 : i32
    return %c0_i32, %c0_i32_0 : i32, i32
  }
  func.func @transform_7(%arg0: i32) -> (i32, i32) {
    %c0_i32 = arith.constant 0 : i32
    %c0_i32_0 = arith.constant 0 : i32
    %c0_i32_1 = arith.constant 0 : i32
    return %c0_i32, %c0_i32_0 : i32, i32
  }
  func.func @transform_8(%arg0: i32) -> (i32, i32) {
    %c0_i32 = arith.constant 0 : i32
    %c0_i32_0 = arith.constant 0 : i32
    return %arg0, %c0_i32 : i32, i32
  }
  func.func @transform_9(%arg0: i32) -> (i32, i32) {
    %c0_i32 = arith.constant 0 : i32
    %c0_i32_0 = arith.constant 0 : i32
    return %arg0, %c0_i32 : i32, i32
  }
  func.func @transform_10(%arg0: i32) -> (i32, i32, i32) {
    %c0_i32 = arith.constant 0 : i32
    %c0_i32_0 = arith.constant 0 : i32
    %c0_i32_1 = arith.constant 0 : i32
    return %arg0, %c0_i32, %c0_i32_0 : i32, i32, i32
  }
}

</mosaic_0001>

<bundles_post_ra>
// kernel: dkvmn_forward.1
= control target key start
LH: loop header
LB: loop body
LE: loop exit
PB: predicated region body
PF: predicated region fallthrough
CT: control target
= control target key end

     0   :  { %s3257_s0 = inlined_call_operand.vmem [shape: f32[16,64], index: 0, kind: input, shape index: {}]   ;;  %s3258_s1 = inlined_call_operand.vmem [shape: f32[64,32], index: 1, kind: input, shape index: {}]   ;;  %s3259_s2 = inlined_call_operand.vmem [shape: f32[16,128], index: 2, kind: input, shape index: {}]   ;;  %s3260_s3 = inlined_call_operand.hbm [shape: bf16[16,32,128], index: 3, kind: input, shape index: {}, may-alias: {3,10}]   ;;  %s3261_s4 = inlined_call_operand.vmem [shape: f32[128,128], index: 4, kind: input, shape index: {}]   ;;  %s3262_s5 = inlined_call_operand.vmem [shape: f32[1,128], index: 5, kind: input, shape index: {}]   ;;  %s3263_s6 = inlined_call_operand.vmem [shape: f32[128,128], index: 6, kind: input, shape index: {}]   ;;  %s3264_s7 = inlined_call_operand.vmem [shape: f32[1,128], index: 7, kind: input, shape index: {}]   ;;  %s3265_s8 = inlined_call_operand.hbm [shape: f32[16,32], index: 8, kind: output, shape index: {0}]   ;;  %s3266_s9 = inlined_call_operand.hbm [shape: f32[16,128], index: 9, kind: output, shape index: {1}]   ;;  %s3267_s10 = inlined_call_operand.hbm [shape: bf16[16,32,128], index: 10, kind: output, shape index: {2}, may-alias: {3,10}]  }
   0x1   :  { %3281 = sst [smem:[#allocation24_spill]] %s3257_s0 }
   0x2   :  { %3282 = sst [smem:[#allocation25_spill]] %s3258_s1 }
   0x3   :  { %16 = vsyncpa [#allocation3], 0 }
   0x4   :  { %18 = vsyncpa [#allocation3 + $0x1], 0 }
   0x5   :  { %19 = vsyncpa [#allocation4], 0 }
   0x6   :  { %21 = vsyncpa [#allocation4 + $0x1], 0 }
   0x7   :  { %22 = vsyncpa [#allocation7], 0 }
   0x8   :  { %24 = vsyncpa [#allocation7 + $0x1], 0  ;;  %s2505_s13 = smov 0   ;;  %s2507_s14 = smov 0  }
   0x9   :  { %s2509_s15 = smov 0   ;;  %s2511_s16 = smov 0  }
   0xa LB: > { %s2526_s17 = sadd.s32 4294967295, %s2436_s16   ;;  %s3268_s18 = sadd.s32 4294967294, %s2436_s16   ;;  %s2436_s16 = sphi %s2511_s16, %s3324_s16   ;;  %s2432_s15 = sphi %s2509_s15, %s3323_s15   ;;  %s2428_s14 = sphi %s2507_s14, %s3322_s14   ;;  %s2424_s13 = sphi %s2505_s13, %s3321_s13  }
   0xb   : > { %s2530_s19 = sadd.s32 1, %s2436_s16   ;;  %s110_s20 = sadd.s32 1, %s2432_s15 }
   0xc   : > { %s107_s21 = ssub.s32 %s2436_s16, %s2530_s19  ;;  %p117_p0 = scmp.ne.s32.totalorder %s2432_s15, %s2428_s14 }
   0xd   : > { %p108_p1 = scmp.eq.s32.totalorder %s107_s21, 0  ;;  %p118_p2 = scmp.eq.s32.totalorder %s2436_s16, 0 }
   0xe   : > { %p123_p3 = scmp.ne.s32.totalorder %s2428_s14, %s2424_s13  ;;  %p124_p4 = scmp.eq.s32.totalorder %s2526_s17, 0 }
   0xf   : > { %s2542_s22 = scalar_select %p108_p1, %s2432_s15, %s110_s20  }
  0x10   : > { %p2544_p5 = por %p118_p2, %p117_p0  ;;  %p2548_p6 = por %p124_p4, %p123_p3 }
  0x11   : > { %3283 = sst [smem:[#allocation12_spill]] %s2542_s22  ;;  %p231_p7 = scmp.eq.s32.totalorder %s2526_s17, 1 }
  0x12   : > { %p237_p8 = scmp.eq.s32.totalorder %s3268_s18, 1  ;;  %p2228_p10 = scmp.lt.s32.totalorder %s2436_s16, 2 }
  0x13   : > { %p2557_p11 = por %p231_p7, %p117_p0  ;;  %s338_s27 = sand.u32 1, %s2432_s15  }
  0x14   : > { %p2561_p12 = por %p237_p8, %p123_p3  ;;  %s1805_s28 = sshll.u32 %s2436_s16, 11 }
  0x15   : > { %s3286_s25 = scalar_select %p2557_p11, 1, 0 }
  0x16   : > { %s3287_s26 = scalar_select %p2561_p12, 1, 0 }
  0x17   : > { %s1747_s29 = sshll.u32 %s338_s27, 7  ;;  %s2570_s12 = scalar_lea.hbm %s3260_s3, %s1805_s28 }
  0x18   : > { %s342_s20 = scalar_lea.vmem [#allocation2], %s1747_s29  ;;  %p2574_p13 = pnand %p2228_p10, %p2544_p5 }
  0x19   : > { %s350_s21 = sshll.u32 %s342_s20, 4  ;;  %s2580_s22 = scalar_lea.sflag [#allocation3], %s338_s27  ;;  %s2578_s21 = int_to_ptr.vmem [resolvable:$true] %s350_s21 }
  0x1a   : > { %s2280_s30 = scalar_lea.hbm %s2570_s12, 2048  ;;  %p2282_p1 = pneg %p2574_p13 }
  0x1b   : > { %p2281_p0 = scmp.ne.s32.totalorder %s2570_s12, %s2280_s30  ;;  %s2285_s29 = scalar_lea.hbm %s3260_s3, 4096 }
  0x1c   : > { %p2286_p4 = scmp.lt.u32.totalorder %s2570_s12, %s3260_s3  ;;  %p2287_p5 = scmp.lt.u32.totalorder %s2285_s29, %s2280_s30 }
  0x1d   : > { %p2283_p2 = pnand %p2282_p1, %p2281_p0  ;;  %p2289_p8 = scmp.lt.u32.totalorder %s2280_s30, %s2570_s12 }
  0x1e   : > { %p2288_p7 = por %p2287_p5, %p2286_p4 }
  0x1f   : > { %p2284_p3 = pneg %p2283_p2 }
  0x20   : > { %p2290_p10 = por %p2289_p8, %p2288_p7 }
  0x22   : > { %p2291_p9 = pnand %p2290_p10, %p2284_p3 }
  0x24   : > { %2294 = shalt.err (!%p2291_p9)
}
  0x25   : > { %s2295_s27 = scalar_lea.vmem %s2578_s21, 2048  ;;  %s2438_s28 = smov [#allocation2]  }
  0x26   : > { %p2296_p0 = scmp.ne.s32.totalorder %s2578_s21, %s2295_s27  ;;  %s2300_s23 = sshll.u32 %s2438_s28, 4  ;;  %s2301_s23 = int_to_ptr.vmem [resolvable:$false] %s2300_s23 }
  0x27   : > { %s2302_s11 = scalar_lea.vmem %s2301_s23, 4096  ;;  %p2303_p11 = scmp.lt.s32.totalorder %s2578_s21, %s2301_s23 }
  0x28   : > { %p2298_p2 = pnand %p2296_p0, %p2282_p1  ;;  %p2304_p4 = scmp.lt.s32.totalorder %s2302_s11, %s2295_s27 }
  0x2a   : > { %p2299_p12 = pneg %p2298_p2  ;;  %p2305_p5 = por %p2304_p4, %p2303_p11 }
  0x2c   : > { %p2306_p7 = pnand %p2305_p5, %p2299_p12 }
  0x2e   : > { %2309 = shalt.err (!%p2306_p7)
}
  0x2f   : > { %s2439_s30 = smov 64   ;;  %s2440_s29 = smov 4  }
  0x30   : > { %2217 = dma.hbm_to_vmem [thread:$0]  (!%p2574_p13), %s2570_s12, 2048, %s2578_s21, %s2580_s22, %s2439_s30, %s2439_s30, %s2440_s29  }
  0x31   : > { %p1751_p9 = scmp.ge.s32.totalorder %s2436_s16, 1  ;;  %p358_p1 = scmp.lt.s32.totalorder %s2436_s16, 3 }
  0x33   : > { %p359_p3 = pnand %p1751_p9, %p358_p1 }
  0x35   : > { %362 = sbr.rel (%p359_p3) target bundleno = 859 (0x35b), region = 52 }
  0x3c   : > { %s2611_s20 = sand.u32 1, %s2428_s14  }
  0x3d   : > { %s3270_s27 = sshll.u32 %s2611_s20, 7  ;;  %s365_s28 = scalar_lea.sflag [#allocation3], %s2611_s20 }
  0x3e   : > { %s2617_s23 = scalar_lea.vmem [#allocation2], %s3270_s27 }
  0x3f   : > { %2411 = dma.done.wait (%p2548_p6), %s365_s28, 2048  }
  0x40   : > { %2413 = vsyncadd (%p2548_p6), %s365_s28, 4294965248  ;;  %v2441_v0 = vmov 0.0|0.0   ;;  %vm2442_vm0 = vmmov 0   ;;  %v2443_v1 = vmov 0.0   ;;  %s3289_s1 = sld [smem:[#allocation25_spill]]  ;;  %p423_p6 = scmp.lt.s32.totalorder %s2526_s17, 1 }
  0x41   : > { %2146 = vmatprep.subr.bf16.mxu0 %v2441_v0  ;;  %2073 = vmatprep.mubr.msk.f32.mxu0 %vm2442_vm0, %v2443_v1  ;;  %s3290_s0 = sld [smem:[#allocation24_spill]]  ;;  %vm442_vm1 = vcmask 523264   ;;  %vm516_vm2 = vcmask 261120   ;;  %v530_v18 = vld [vmem:[%s3261_s4] sm:$0xff]  ;;  %v531_v19 = vld [vmem:[%s3261_s4 + $0x8] sm:$0xff]  ;;  %v532_v20 = vld [vmem:[%s3261_s4 + $0x10] sm:$0xff] }
  0x42   : > { %2158 = vmatprep.subr.bf16.mxu1 %v2441_v0  ;;  %2108 = vmatprep.mubr.msk.f32.mxu1 %vm2442_vm0, %v2443_v1  ;;  %s2648_s24 = scalar_select %p423_p6, %s2526_s17, 1  ;;  %v2159_v21 = vpack.c.bf16 %v531_v19, %v530_v18  ;;  %v533_v22 = vld [vmem:[%s3261_s4 + $0x18] sm:$0xff]  ;;  %v534_v24 = vld [vmem:[%s3261_s4 + $0x20] sm:$0xff]  ;;  %v535_v25 = vld [vmem:[%s3261_s4 + $0x28] sm:$0xff] }
  0x43   : > { %v2162_v23 = vpack.c.bf16 %v533_v22, %v532_v20  ;;  %v536_v26 = vld [vmem:[%s3261_s4 + $0x30] sm:$0xff]  ;;  %v2165_v27 = vpack.c.bf16 %v535_v25, %v534_v24  ;;  %v537_v28 = vld [vmem:[%s3261_s4 + $0x38] sm:$0xff]  ;;  %v629_v29 = vld [vmem:[%s3263_s6] sm:$0xff]  ;;  %v728_v20 = vlaneseq  ;;  %s1753_s22 = sshll.u32 %s2611_s20, 3  ;;  %s1536_s29 = scalar_lea.sflag [#allocation4], %s2611_s20 }
  0x44   : > { %s3271_s28 = sshll.u32 %s2648_s24, 3  ;;  %2160 = vmatpush3.bf16.msra.mxu1 %v2159_v21  ;;  %v630_v30 = vld [vmem:[%s3263_s6 + $0x8] sm:$0xff]  ;;  %v631_v32 = vld [vmem:[%s3263_s6 + $0x10] sm:$0xff]  ;;  %v2168_v33 = vpack.c.bf16 %v537_v28, %v536_v26  ;;  %v632_v34 = vld [vmem:[%s3263_s6 + $0x18] sm:$0xff]  ;;  %s3291_s18 = sshll.u32 %s2648_s24, 3 }
  0x45   : > { %2161 = vmatprep.subr.bf16.mxu1 %v2441_v0  ;;  %v2183_v31 = vpack.c.bf16 %v630_v30, %v629_v29  ;;  %v538_v35 = vld [vmem:[%s3261_s4 + $0x40] sm:$0xff]  ;;  %v539_v36 = vld [vmem:[%s3261_s4 + $0x48] sm:$0xff]  ;;  %v2186_v37 = vpack.c.bf16 %v632_v34, %v631_v32  ;;  %v540_v41 = vld [vmem:[%s3261_s4 + $0x50] sm:$0xff]  ;;  %s2829_s27 = scalar_lea.vmem [#allocation5], %s1753_s22  ;;  %p3293_p12 = scmp.ne.s32.totalorder %s3286_s25, 0 }
  0x46   : > { %v434_v2 = vld [vmem:[%s3289_s1] sm:$0xff]  ;;  %v435_v3 = vld [vmem:[%s3289_s1 + $0x8] sm:$0xff]  ;;  %v436_v4 = vld [vmem:[%s3289_s1 + $0x10] sm:$0xff]  ;;  %v2171_v40 = vpack.c.bf16 %v539_v36, %v538_v35  ;;  %s1559_s30 = sshll.u32 %s2829_s27, 4  ;;  %s1560_s30 = int_to_ptr.vmem [resolvable:$true] %s1559_s30 }
  0x47   : > { %v2147_v5 = vpack.c.bf16 %v435_v3, %v434_v2  ;;  %v437_v6 = vld [vmem:[%s3289_s1 + $0x18] sm:$0xff]  ;;  %v438_v8 = vld [vmem:[%s3289_s1 + $0x20] sm:$0xff]  ;;  %v439_v9 = vld [vmem:[%s3289_s1 + $0x28] sm:$0xff]  ;;  %s426_s12 = scalar_lea.vmem %s3290_s0, %s3271_s28  ;;  %s2445_s0 = smov [#allocation5]  }
  0x48   : > { %v2150_v7 = vpack.c.bf16 %v437_v6, %v436_v4  ;;  %v2153_v10 = vpack.c.bf16 %v439_v9, %v438_v8  ;;  %v440_v11 = vld [vmem:[%s3289_s1 + $0x30] sm:$0xff]  ;;  %v441_v12 = vld [vmem:[%s3289_s1 + $0x38] sm:$0xff]  ;;  %v433_v14 = vld [vmem:[%s426_s12] sm:$0xff]  ;;  %2163 = vmatpush3.bf16.msra.mxu1 %v2162_v23  ;;  %s430_s1 = scalar_lea.vmem %s3259_s2, %s3291_s18  ;;  %v2793_v23 = vshrl.u32 %v728_v20, 7  ;;  %s3272_s12 = sshll.u32 %s2526_s17, 7 }
  0x49   : > { %2148 = vmatpush3.bf16.msra.mxu0 %v2147_v5  ;;  %v2156_v13 = vpack.c.bf16 %v441_v12, %v440_v11  ;;  %2164 = vmatprep.subr.bf16.mxu1 %v2441_v0  ;;  %v633_v38 = vld [vmem:[%s3263_s6 + $0x20] sm:$0xff]  ;;  %v634_v39 = vld [vmem:[%s3263_s6 + $0x28] sm:$0xff]  ;;  %v541_v42 = vld [vmem:[%s3261_s4 + $0x58] sm:$0xff]  ;;  %s2868_s11 = scalar_lea.hbm %s3265_s8, %s3272_s12  ;;  %s2310_s18 = scalar_lea.vmem %s1560_s30, 128 }
  0x4a   : > { %2149 = vmatprep.subr.bf16.mxu0 %v2441_v0  ;;  %v2189_v43 = vpack.c.bf16 %v634_v39, %v633_v38  ;;  %v635_v44 = vld [vmem:[%s3263_s6 + $0x30] sm:$0xff]  ;;  %v636_v45 = vld [vmem:[%s3263_s6 + $0x38] sm:$0xff]  ;;  %v2174_v46 = vpack.c.bf16 %v541_v42, %v540_v41  ;;  %v542_v47 = vld [vmem:[%s3261_s4 + $0x60] sm:$0xff]  ;;  %v2797_v32 = vsub.s32 0, %v2793_v23  ;;  %p2311_p11 = scmp.ne.s32.totalorder %s1560_s30, %s2310_s18  ;;  %s2314_s28 = sshll.u32 %s2445_s0, 4  ;;  %s2315_s28 = int_to_ptr.vmem [resolvable:$false] %s2314_s28 }
  0x4b   : > { %v543_v48 = vld [vmem:[%s3261_s4 + $0x68] sm:$0xff]  ;;  %v2192_v49 = vpack.c.bf16 %v636_v45, %v635_v44  ;;  %v637_v50 = vld [vmem:[%s3263_s6 + $0x40] sm:$0xff]  ;;  %v544_v53 = vld [vmem:[%s3261_s4 + $0x70] sm:$0xff]  ;;  %p2317_p10 = scmp.lt.s32.totalorder %s1560_s30, %s2315_s28 }
  0x4c   : > { %2166 = vmatpush3.bf16.msra.mxu1 %v2165_v27  ;;  %v638_v51 = vld [vmem:[%s3263_s6 + $0x48] sm:$0xff]  ;;  %v2177_v52 = vpack.c.bf16 %v543_v48, %v542_v47  ;;  %v545_v54 = vld [vmem:[%s3261_s4 + $0x78] sm:$0xff]  ;;  %v639_v56 = vld [vmem:[%s3263_s6 + $0x50] sm:$0xff]  ;;  %p2312_p13 = pnand %p2311_p11, %p3293_p12 }
  0x4d   : > { %2151 = vmatpush3.bf16.msra.mxu0 %v2150_v7  ;;  %2167 = vmatprep.subr.bf16.mxu1 %v2441_v0  ;;  %v2195_v55 = vpack.c.bf16 %v638_v51, %v637_v50  ;;  %v640_v57 = vld [vmem:[%s3263_s6 + $0x58] sm:$0xff]  ;;  %v2180_v58 = vpack.c.bf16 %v545_v54, %v544_v53  ;;  %v641_v60 = vld [vmem:[%s3263_s6 + $0x60] sm:$0xff]  ;;  %v642_v61 = vld [vmem:[%s3263_s6 + $0x68] sm:$0xff]  ;;  %v908_v50 = vsub.s32 1, %v2793_v23 }
  0x4e   : > { %2152 = vmatprep.subr.bf16.mxu0 %v2441_v0  ;;  %v2198_v59 = vpack.c.bf16 %v640_v57, %v639_v56  ;;  %v529_v62 = vld [vmem:[%s430_s1] sm:$0xff]  ;;  %v2201_v63 = vpack.c.bf16 %v642_v61, %v641_v60  ;;  %v644_v2 = vld [vmem:[%s3263_s6 + $0x78] sm:$0xff]  ;;  %p2313_p8 = pneg %p2312_p13  ;;  %s2316_s1 = scalar_lea.vmem %s2315_s28, 256 }
  0x4f   : > { %v1759_v9 = vld [vmem:[%s3262_s5] ss:$0 sm:$0xff]  ;;  %p2318_p0 = scmp.lt.s32.totalorder %s2316_s1, %s2310_s18 }
  0x50   : > { %2169 = vmatpush3.bf16.msra.mxu1 %v2168_v33 }
  0x51   : > { %2154 = vmatpush3.bf16.msra.mxu0 %v2153_v10  ;;  %2170 = vmatprep.subr.bf16.mxu1 %v2441_v0  ;;  %p2319_p2 = por %p2318_p0, %p2317_p10 }
  0x52   : > { %2155 = vmatprep.subr.bf16.mxu0 %v2441_v0 }
  0x53   : > { %p2320_p4 = pnand %p2319_p2, %p2313_p8 }
  0x54   : > { %2172 = vmatpush3.bf16.msra.mxu1 %v2171_v40 }
  0x55   : > { %2157 = vmatpush3.bf16.msra.mxu0 %v2156_v13  ;;  %2173 = vmatprep.subr.bf16.mxu1 %v2441_v0 }
  0x56   : > { %2182 = vmatprep.subr.bf16.mxu0 %v2441_v0 }
  0x58   : > { %2074 = vmatmul.mubr.msk.f32.vlgmr.msra.gmra.mrb[0].mxu0 %vm442_vm1, %v433_v14  ;;  %2175 = vmatpush3.bf16.msra.mxu1 %v2174_v46 }
  0x59   : > { %2143 = vmatprep.mubr.msk.f32.mxu0 %vm2442_vm0, %v2443_v1  ;;  %2184 = vmatpush3.bf16.msra.mxu0 %v2183_v31  ;;  %v643_v1 = vld [vmem:[%s3263_s6 + $0x70] sm:$0xff] }
  0x5a   : > { %2185 = vmatprep.subr.bf16.mxu0 %v2441_v0  ;;  %2176 = vmatprep.subr.bf16.mxu1 %v2441_v0  ;;  %v2204_v3 = vpack.c.bf16 %v644_v2, %v643_v1 }
  0x5c   : > { %2178 = vmatpush3.bf16.msra.mxu1 %v2177_v52 }
  0x5d   : > { %2187 = vmatpush3.bf16.msra.mxu0 %v2186_v37  ;;  %2179 = vmatprep.subr.bf16.mxu1 %v2441_v0 }
  0x5e   : > { %2188 = vmatprep.subr.bf16.mxu0 %v2441_v0 }
  0x60   : > { %2181 = vmatpush3.bf16.msra.mxu1 %v2180_v58 }
  0x61   : > { %2190 = vmatpush3.bf16.msra.mxu0 %v2189_v43 }
  0x62   : > { %2191 = vmatprep.subr.bf16.mxu0 %v2441_v0 }
  0x63   : > { %2109 = vmatmul.mubr.f32.vlgmr.msra.gmra.mrb[0].mxu1 %v529_v62 }
  0x65   : > { %2193 = vmatpush3.bf16.msra.mxu0 %v2192_v49 }
  0x66   : > { %2194 = vmatprep.subr.bf16.mxu0 %v2441_v0 }
  0x69   : > { %2196 = vmatpush3.bf16.msra.mxu0 %v2195_v55 }
  0x6a   : > { %2197 = vmatprep.subr.bf16.mxu0 %v2441_v0 }
  0x6d   : > { %2199 = vmatpush3.bf16.msra.mxu0 %v2198_v59  ;;  %v946_v59 = vsub.s32 3, %v2793_v23 }
  0x6e   : > { %2200 = vmatprep.subr.bf16.mxu0 %v2441_v0 }
  0x71   : > { %2202 = vmatpush3.bf16.msra.mxu0 %v2201_v63  ;;  %v965_v63 = vsub.s32 4, %v2793_v23 }
  0x72   : > { %2203 = vmatprep.subr.bf16.mxu0 %v2441_v0  ;;  %v1761_v0 = vld [vmem:[%s3264_s7] ss:$0 sm:$0xff] }
  0x75   : > { %2205 = vmatpush3.bf16.msra.mxu0 %v2204_v3 }
  0x78   : > { %2144 = vmatmul.mubr.f32.vlgmr.msra.gmra.mrb[2].mxu0 %v529_v62 }
 0x12b   : > { %v2666_v15 = vpop.f32.mrb[0].mxu0 }
 0x12c   : > { %v2075_v16 = vpop.f32.mrb[1].mxu0  ;;  %v517_v17 = vsel %vm516_vm2, %v2666_v15, -inf }
 0x12d   : > { %518 = vmax.xlane.f32.xlu0 %v517_v17  ;;  %v2444_v17 = vmov 1966171168  }
 0x12e   : > { %v726_v18 = vunpack.c.l.s4 %v2444_v17  ;;  %v1003_v17 = vsub.s32 6, %v2793_v23 }
 0x130   : > { %v727_v22 = vunpack.c.0.s8 %v726_v18 }
 0x132   : > { %v730_v24 = vsub.s32 %v727_v22, %v2793_v23  ;;  %v1022_v22 = vsub.s32 7, %v2793_v23 }
 0x136   : > { %v619_v10 = vpop.f32.mrb[0].mxu1 }
 0x137   : > { %v620_v11 = vadd.f32 %v1759_v9, %v619_v10  ;;  %v2110_v12 = vpop.f32.mrb[1].mxu1 }
 0x138   : > { %v984_v12 = vsub.s32 5, %v2793_v23 }
 0x139   : > { %v1760_v13 = vmul.f32 -1.442695, %v620_v11 }
 0x14b   : > { %v718_v14 = vpop.f32.mrb[2].mxu0 }
 0x14c   : > { %v2145_v16 = vpop.f32.mrb[3].mxu0 }
 0x1ba   : > { %v519_v4 = vpop.xlane.xlu0 %518 }
 0x1bb   : > { %v520_v5 = vsub.f32 %v2666_v15, %v519_v4  ;;  %v719_v15 = vadd.f32 %v1761_v0, %v718_v14 }
 0x1bd   : > { %v521_v6 = vmul.f32 1.442695, %v520_v5 }
 0x1bf   : > { %2270 = vpow2.f32 %v521_v6  ;;  %v927_v6 = vsub.s32 2, %v2793_v23 }
 0x1c0   : > { %2272 = vpow2.f32 %v1760_v13 }
 0x1c1   : > { %2274 = vtanh.f32 %v719_v15 }
 0x1c9   : > { %v2271_v7 = vpop.eup %2270 }
 0x1ca   : > { %v523_v8 = vsel %vm516_vm2, %v2271_v7, 0.0  ;;  %v2273_v19 = vpop.eup %2272 }
 0x1cb   : > { %524 = vadd.xlane.f32.xlu0 %v523_v8  ;;  %v626_v21 = vadd.f32 1.0, %v2273_v19  ;;  %v2275_v25 = vpop.eup %2274 }
 0x1cc   : > { %v781_v26 = vrot.slane %v2275_v25, %v730_v24  ;;  %v774_v39 = vcombine.high %v2275_v25, %v2275_v25 }
 0x1cd   : > { %2276 = vrcp.f32 %v626_v21 }
 0x1ce   : > { %v789_v29 = vcombine.high %v781_v26, %v781_v26  ;;  %v797_v34 = vrot.slane %v781_v26, %v730_v24  ;;  %v788_v46 = vrot.slane %v774_v39, %v730_v24 }
 0x1d0   : > { %v811_v33 = vrot.slane %v789_v29, %v730_v24  ;;  %v2803_v38 = vrot.slane %v797_v34, %v2797_v32  ;;  %v804_v49 = vrot.slane %v788_v46, %v730_v24  ;;  %v819_v56 = vcombine.high %v797_v34, %v797_v34 }
 0x1d1   : > { %v790_v2 = vcombine.high %v788_v46, %v788_v46 }
 0x1d2   : > { %v2800_v36 = vrot.slane %v811_v33, %v2797_v32  ;;  %v821_v43 = vcombine.high %v811_v33, %v811_v33  ;;  %v2820_v53 = vrot.slane %v804_v49, %v2797_v32  ;;  %v2834_v61 = vrot.slane %v819_v56, %v2797_v32 }
 0x1d3   : > { %v818_v4 = vrot.slane %v790_v2, %v730_v24  ;;  %v820_v11 = vcombine.high %v804_v49, %v804_v49 }
 0x1d4   : > { %v2812_v45 = vrot.slane %v821_v43, %v2797_v32 }
 0x1d5   : > { %v2842_v8 = vrot.slane %v818_v4, %v2797_v32  ;;  %v2849_v0 = vrot.slane %v820_v11, %v2797_v32  ;;  %v822_v16 = vcombine.high %v818_v4, %v818_v4 }
 0x1d7   : > { %v2277_v27 = vpop.eup %2276  ;;  %v2856_v19 = vrot.slane %v822_v16, %v2797_v32 }
 0x1d8   : > { %v731_v28 = vrot.slane %v2277_v27, %v730_v24  ;;  %v724_v41 = vcombine.high %v2277_v27, %v2277_v27 }
 0x1da   : > { %v739_v30 = vcombine.high %v731_v28, %v731_v28  ;;  %v747_v37 = vrot.slane %v731_v28, %v730_v24  ;;  %v738_v48 = vrot.slane %v724_v41, %v730_v24 }
 0x1dc   : > { %v761_v35 = vrot.slane %v739_v30, %v730_v24  ;;  %v2809_v42 = vrot.slane %v747_v37, %v2797_v32  ;;  %v754_v51 = vrot.slane %v738_v48, %v730_v24  ;;  %v769_v60 = vcombine.high %v747_v37, %v747_v37 }
 0x1dd   : > { %v740_v3 = vcombine.high %v738_v48, %v738_v48 }
 0x1de   : > { %v2806_v40 = vrot.slane %v761_v35, %v2797_v32  ;;  %v771_v44 = vcombine.high %v761_v35, %v761_v35  ;;  %v2823_v55 = vrot.slane %v754_v51, %v2797_v32  ;;  %v2838_v1 = vrot.slane %v769_v60, %v2797_v32 }
 0x1df   : > { %v770_v13 = vcombine.high %v754_v51, %v754_v51 }
 0x1e0   : > { %v2815_v47 = vrot.slane %v771_v44, %v2797_v32  ;;  %3292 = vst [vmem:[#allocation13_spill] sm:$0xff] %v2823_v55 }
 0x1e1   : > { %v2852_v14 = vrot.slane %v770_v13, %v2797_v32 }
 0x258   : > { %v525_v31 = vpop.xlane.xlu0 %524 }
 0x259   : > { %2278 = vrcp.f32 %v525_v31 }
 0x263   : > { %v2279_v52 = vpop.eup %2278 }
 0x264   : > { %v527_v54 = vmul.f32 %v2279_v52, %v2271_v7  ;;  %v768_v7 = vrot.slane %v740_v3, %v730_v24 }
 0x266   : > { %v909_v57 = vrot.slane %v527_v54, %v908_v50  ;;  %v890_v58 = vrot.slane %v527_v54, %v2797_v32  ;;  %528 = vst.msk [vmem:[%s2829_s27] sm:$0xff] %vm516_vm2, %v527_v54  ;;  %v947_v62 = vrot.slane %v527_v54, %v946_v59  ;;  %v966_v5 = vrot.slane %v527_v54, %v965_v63 }
 0x267   : > { %v2845_v9 = vrot.slane %v768_v7, %v2797_v32  ;;  %v928_v10 = vrot.slane %v527_v54, %v927_v6  ;;  %v985_v15 = vrot.slane %v527_v54, %v984_v12  ;;  %v772_v18 = vcombine.high %v768_v7, %v768_v7 }
 0x268   : > { %911 = vbcast.lane.b32.xlu0 %v909_v57, 256  ;;  %892 = vbcast.lane.b32.xlu1 %v890_v58, 256  ;;  %v1004_v21 = vrot.slane %v527_v54, %v1003_v17  ;;  %v1023_v24 = vrot.slane %v527_v54, %v1022_v22 }
 0x269   : > { %v2859_v20 = vrot.slane %v772_v18, %v2797_v32 }
 0x26c   : > { %953 = vbcast.lane.b32.xlu0 %v947_v62, 264  ;;  %896 = vbcast.lane.b32.xlu1 %v890_v58, 264 }
 0x270   : > { %968 = vbcast.lane.b32.xlu0 %v966_v5, 256  ;;  %915 = vbcast.lane.b32.xlu1 %v909_v57, 264 }
 0x274   : > { %904 = vbcast.lane.b32.xlu0 %v890_v58, 280  ;;  %930 = vbcast.lane.b32.xlu1 %v928_v10, 256 }
 0x278   : > { %957 = vbcast.lane.b32.xlu0 %v947_v62, 272  ;;  %934 = vbcast.lane.b32.xlu1 %v928_v10, 264 }
 0x27c   : > { %991 = vbcast.lane.b32.xlu0 %v985_v15, 264  ;;  %900 = vbcast.lane.b32.xlu1 %v890_v58, 272 }
 0x280   : > { %976 = vbcast.lane.b32.xlu0 %v966_v5, 272  ;;  %919 = vbcast.lane.b32.xlu1 %v909_v57, 272 }
 0x284   : > { %1010 = vbcast.lane.b32.xlu0 %v1004_v21, 264  ;;  %949 = vbcast.lane.b32.xlu1 %v947_v62, 256 }
 0x288   : > { %995 = vbcast.lane.b32.xlu0 %v985_v15, 272  ;;  %938 = vbcast.lane.b32.xlu1 %v928_v10, 272 }
 0x28c   : > { %1029 = vbcast.lane.b32.xlu0 %v1023_v24, 264  ;;  %972 = vbcast.lane.b32.xlu1 %v966_v5, 264 }
 0x290   : > { %1014 = vbcast.lane.b32.xlu0 %v1004_v21, 272  ;;  %923 = vbcast.lane.b32.xlu1 %v909_v57, 280 }
 0x294   : > { %1033 = vbcast.lane.b32.xlu0 %v1023_v24, 272  ;;  %987 = vbcast.lane.b32.xlu1 %v985_v15, 256 }
 0x298   : > { %1037 = vbcast.lane.b32.xlu0 %v1023_v24, 280  ;;  %942 = vbcast.lane.b32.xlu1 %v928_v10, 280 }
 0x29c   : > { %1006 = vbcast.lane.b32.xlu1 %v1004_v21, 256 }
 0x2a0   : > { %961 = vbcast.lane.b32.xlu1 %v947_v62, 280 }
 0x2a4   : > { %1025 = vbcast.lane.b32.xlu1 %v1023_v24, 256 }
 0x2a8   : > { %980 = vbcast.lane.b32.xlu1 %v966_v5, 280 }
 0x2ac   : > { %999 = vbcast.lane.b32.xlu1 %v985_v15, 280 }
 0x2b0   : > { %1018 = vbcast.lane.b32.xlu1 %v1004_v21, 280 }
 0x2b1   : > { %2323 = shalt.err (!%p2320_p4)
}
 0x2b2   : > { %s2324_s27 = scalar_lea.hbm %s2868_s11, 128  ;;  %s2328_s0 = scalar_lea.hbm %s3265_s8, 256 }
 0x2b3   : > { %p2325_p5 = scmp.ne.s32.totalorder %s2868_s11, %s2324_s27  ;;  %p2329_p1 = scmp.lt.u32.totalorder %s2868_s11, %s3265_s8 }
 0x2b4   : > { %p2330_p3 = scmp.lt.u32.totalorder %s2328_s0, %s2324_s27  ;;  %p2332_p11 = scmp.lt.u32.totalorder %s2324_s27, %s2868_s11 }
 0x2b5   : > { %p2326_p7 = pnand %p2325_p5, %p3293_p12 }
 0x2b6   : > { %p2331_p6 = por %p2330_p3, %p2329_p1 }
 0x2b7   : > { %p2327_p9 = pneg %p2326_p7 }
 0x2b8   : > { %p2333_p13 = por %p2332_p11, %p2331_p6 }
 0x2ba   : > { %p2334_p8 = pnand %p2333_p13, %p2327_p9 }
 0x2bc   : > { %2337 = shalt.err (!%p2334_p8)
}
 0x2bd   : > { %2208 = dma.vmem_to_hbm [thread:$0]  (%p3293_p12), %s1560_s30, 128, %s2868_s11, %s1536_s29   ;;  %v1985_v23 = vld [vmem:[%s2617_s23 + $0x10] sm:$0xff]   ;;  %v1841_v25 = vld [vmem:[%s2617_s23] sm:$0xff]   ;;  %v2912_v54 = vld [vmem:[%s2617_s23 + $0x8] sm:$0xff]   ;;  %vm1151_vm3 = vcmask 1041409   ;;  %vm1153_vm4 = vcmask 1042434  }
 0x2be   : > { %v1850_v26 = vunpack.c.l.bf16 %v1985_v23  ;;  %v1842_v27 = vunpack.c.l.bf16 %v1841_v25  ;;  %v2892_v28 = vld [vmem:[%s2617_s23 + $0x30] sm:$0xff]   ;;  %v2900_v34 = vld [vmem:[%s2617_s23 + $0x40] sm:$0xff]   ;;  %v1843_v35 = vunpack.c.h.bf16 %v1841_v25  ;;  %v1851_v48 = vunpack.c.h.bf16 %v1985_v23  ;;  %v2928_v10 = vld [vmem:[%s2617_s23 + $0x38] sm:$0xff]   ;;  %s3294_s12 = sshll.u32 %s2611_s20, 7  ;;  %s415_s30 = scalar_lea.vmem [#allocation6], %s1753_s22 }
 0x2bf   : > { %v1867_v33 = vunpack.c.h.bf16 %v2892_v28  ;;  %v1874_v46 = vunpack.c.l.bf16 %v2900_v34  ;;  %v1987_v60 = vld [vmem:[%s2617_s23 + $0x20] sm:$0xff]   ;;  %v1847_v3 = vunpack.c.h.bf16 %v2912_v54  ;;  %v1870_v23 = vunpack.c.l.bf16 %v2928_v10  ;;  %s2953_s11 = scalar_lea.vmem [#allocation8], %s3294_s12  ;;  %s1572_s29 = sshll.u32 %s415_s30, 4  ;;  %s3182_s29 = int_to_ptr.vmem [resolvable:$true] %s1572_s29 }
 0x2c0   : > { %v1858_v13 = vunpack.c.l.bf16 %v1987_v60  ;;  %vm1155_vm5 = vcmask 1043459   ;;  %vm1157_vm6 = vcmask 1044484   ;;  %vm1159_vm7 = vcmask 1045509   ;;  %s1839_s18 = sshll.u32 %s2526_s17, 11  ;;  %s1586_s1 = sshll.u32 %s2953_s11, 4  ;;  %s3189_s1 = int_to_ptr.vmem [resolvable:$true] %s1586_s1 }
 0x2c1   : > { %vm1161_vm8 = vcmask 1046534   ;;  %vm1163_vm9 = vcmask 1047559   ;;  %s3316_s27 = sshll.u32 %s2526_s17, 7  ;;  %s3187_s28 = scalar_lea.hbm %s3267_s10, %s1839_s18 }
 0x2c2   : > { %s3180_s0 = scalar_lea.hbm %s3266_s9, %s3316_s27  ;;  %s2338_s12 = scalar_lea.vmem %s3182_s29, 128 }
 0x2c3   : > { %p2339_p10 = scmp.ne.s32.totalorder %s3182_s29, %s2338_s12 }
 0x2c5   : > { %p2340_p0 = pnand %p2339_p10, %p3293_p12 }
 0x2c7   : > { %p2341_p2 = pneg %p2340_p0 }
 0x2da   : > { %v912_v29 = vpop.permute.xlu0 %911  ;;  %v893_v30 = vpop.permute.xlu1 %892 }
 0x2db   : > { %v2894_v31 = vmul.f32 %v1850_v26, %v912_v29  ;;  %v2896_v32 = vmul.f32 %v1842_v27, %v893_v30  ;;  %v1315_v41 = vmul.f32 %v2800_v36, %v912_v29  ;;  %v1311_v51 = vmul.f32 %v2803_v38, %v893_v30  ;;  %v2943_v30 = vld [vmem:[%s2617_s23 + $0x50] sm:$0xff]  }
 0x2dd   : > { %v1211_v37 = vmul.f32 %v2806_v40, %v2894_v31  ;;  %v1207_v39 = vmul.f32 %v2809_v42, %v2896_v32 }
 0x2de   : > { %v954_v43 = vpop.permute.xlu0 %953  ;;  %v897_v44 = vpop.permute.xlu1 %896 }
 0x2df   : > { %v1243_v49 = vsub.f32 %v1850_v26, %v1211_v37  ;;  %v1239_v50 = vsub.f32 %v1842_v27, %v1207_v39  ;;  %v2909_v52 = vmul.f32 %v1867_v33, %v954_v43  ;;  %v2914_v56 = vmul.f32 %v1843_v35, %v897_v44 }
 0x2e0   : > { %v1324_v5 = vmul.f32 %v2812_v45, %v954_v43  ;;  %v1312_v12 = vmul.f32 %v2803_v38, %v897_v44  ;;  %v1859_v37 = vunpack.c.h.bf16 %v1987_v60 }
 0x2e1   : > { %v1347_v57 = vadd.f32 %v1315_v41, %v1243_v49  ;;  %v1343_v58 = vadd.f32 %v1311_v51, %v1239_v50  ;;  %v1220_v59 = vmul.f32 %v2815_v47, %v2909_v52  ;;  %v1208_v62 = vmul.f32 %v2809_v42, %v2914_v56 }
 0x2e2   : > { %v969_v63 = vpop.permute.xlu0 %968  ;;  %v916_v2 = vpop.permute.xlu1 %915  ;;  %v1883_v49 = vunpack.c.h.bf16 %v2943_v30  ;;  %v1846_v50 = vunpack.c.l.bf16 %v2912_v54  ;;  %v2973_v54 = vld [vmem:[%s2617_s23 + $0x18] sm:$0xff]  }
 0x2e3   : > { %v1252_v4 = vsub.f32 %v1867_v33, %v1220_v59  ;;  %v2923_v6 = vmul.f32 %v1874_v46, %v969_v63  ;;  %v2925_v7 = vmul.f32 %v1851_v48, %v916_v2  ;;  %v1240_v11 = vsub.f32 %v1843_v35, %v1208_v62  ;;  %v2964_v62 = vld [vmem:[%s2617_s23 + $0x48] sm:$0xff]  }
 0x2e4   : > { %v1327_v21 = vmul.f32 %v2820_v53, %v969_v63  ;;  %v1316_v27 = vmul.f32 %v2800_v36, %v916_v2 }
 0x2e5   : > { %v2931_v15 = vadd.f32 %v1324_v5, %v1252_v4  ;;  %v1223_v16 = vmul.f32 %v2823_v55, %v2923_v6  ;;  %v1212_v17 = vmul.f32 %v2806_v40, %v2925_v7  ;;  %v1344_v18 = vadd.f32 %v1312_v12, %v1240_v11 }
 0x2e6   : > { %v905_v22 = vpop.permute.xlu0 %904  ;;  %v931_v24 = vpop.permute.xlu1 %930 }
 0x2e7   : > { %v1255_v25 = vsub.f32 %v1874_v46, %v1223_v16  ;;  %v1244_v26 = vsub.f32 %v1851_v48, %v1212_v17  ;;  %v2940_v29 = vmul.f32 %v1847_v3, %v905_v22  ;;  %v1907_v33 = vpack.c.bf16 %v1344_v18, %v1343_v58 }
 0x2e8   : > { %v2945_v35 = vmul.f32 %v1858_v13, %v931_v24  ;;  %v1314_v59 = vmul.f32 %v2803_v38, %v905_v22  ;;  %v1319_v2 = vmul.f32 %v2834_v61, %v931_v24  ;;  %v2984_v24 = vld [vmem:[%s2617_s23 + $0x60] sm:$0xff]  }
 0x2e9   : > { %v2947_v39 = vadd.f32 %v1327_v21, %v1255_v25  ;;  %v1348_v41 = vadd.f32 %v1316_v27, %v1244_v26  ;;  %v1210_v43 = vmul.f32 %v2809_v42, %v2940_v29  ;;  %1908 = vst [vmem:[%s2953_s11] sm:$0xff] %v1907_v33   ;;  %v1854_v27 = vunpack.c.l.bf16 %v2973_v54 }
 0x2ea   : > { %v1215_v44 = vmul.f32 %v2838_v1, %v2945_v35  ;;  %v958_v46 = vpop.permute.xlu0 %957  ;;  %v935_v48 = vpop.permute.xlu1 %934 }
 0x2eb   : > { %v1917_v51 = vpack.c.bf16 %v1348_v41, %v1347_v57  ;;  %v1242_v58 = vsub.f32 %v1847_v3, %v1210_v43  ;;  %v2961_v60 = vmul.f32 %v1870_v23, %v958_v46  ;;  %v2967_v4 = vmul.f32 %v1859_v37, %v935_v48 }
 0x2ec   : > { %v1247_v63 = vsub.f32 %v1858_v13, %v1215_v44  ;;  %v1878_v13 = vunpack.c.l.bf16 %v2964_v62  ;;  %v1325_v18 = vmul.f32 %v2812_v45, %v958_v46  ;;  %v1320_v26 = vmul.f32 %v2834_v61, %v935_v48 }
 0x2ed   : > { %2000 = vst [vmem:[%s2953_s11 + $0x10] sm:$0xff] %v1917_v51   ;;  %v1346_v5 = vadd.f32 %v1314_v59, %v1242_v58  ;;  %v1221_v11 = vmul.f32 %v2815_v47, %v2961_v60  ;;  %v1216_v3 = vmul.f32 %v2838_v1, %v2967_v4 }
 0x2ee   : > { %v1351_v57 = vadd.f32 %v1319_v2, %v1247_v63  ;;  %v992_v12 = vpop.permute.xlu0 %991  ;;  %v901_v16 = vpop.permute.xlu1 %900  ;;  %v3000_v2 = vld [vmem:[%s2617_s23 + $0x58] sm:$0xff]  }
 0x2ef   : > { %v1253_v17 = vsub.f32 %v1870_v23, %v1221_v11  ;;  %v2979_v21 = vmul.f32 %v1883_v49, %v992_v12  ;;  %v2981_v22 = vmul.f32 %v1846_v50, %v901_v16  ;;  %v1248_v25 = vsub.f32 %v1859_v37, %v1216_v3  ;;  %3298 = vst [vmem:[#allocation17_spill] sm:$0xff] %v3000_v2 }
 0x2f0   : > { %v1332_v44 = vmul.f32 %v2842_v8, %v992_v12  ;;  %v1891_v37 = vunpack.c.h.bf16 %v2984_v24  ;;  %v1313_v59 = vmul.f32 %v2803_v38, %v901_v16  ;;  %v1886_v16 = vunpack.c.l.bf16 %v3000_v2 }
 0x2f1   : > { %3295 = vst [vmem:[#allocation14_spill] sm:$0xff] %v2979_v21  ;;  %v2988_v33 = vadd.f32 %v1325_v18, %v1253_v17  ;;  %v1228_v41 = vmul.f32 %v2845_v9, %v2979_v21  ;;  %v1209_v23 = vmul.f32 %v2809_v42, %v2981_v22  ;;  %v1352_v43 = vadd.f32 %v1320_v26, %v1248_v25 }
 0x2f2   : > { %v977_v46 = vpop.permute.xlu0 %976  ;;  %v920_v51 = vpop.permute.xlu1 %919  ;;  %v1866_v42 = vunpack.c.l.bf16 %v2892_v28 }
 0x2f3   : > { %3296 = vst [vmem:[#allocation15_spill] sm:$0xff] %v2988_v33  ;;  %v1260_v48 = vsub.f32 %v1883_v49, %v1228_v41  ;;  %v1241_v58 = vsub.f32 %v1846_v50, %v1209_v23  ;;  %v2997_v63 = vmul.f32 %v1878_v13, %v977_v46  ;;  %v1927_v11 = vpack.c.bf16 %v1352_v43, %v1351_v57  ;;  %v3010_v49 = vld [vmem:[%s2617_s23 + $0x28] sm:$0xff]  }
 0x2f4   : > { %v3002_v3 = vmul.f32 %v1854_v27, %v920_v51  ;;  %v1329_v26 = vmul.f32 %v2820_v53, %v977_v46  ;;  %v1317_v43 = vmul.f32 %v2800_v36, %v920_v51 }
 0x2f5   : > { %3297 = vst [vmem:[#allocation16_spill] sm:$0xff] %v2997_v63  ;;  %v3005_v17 = vadd.f32 %v1332_v44, %v1260_v48  ;;  %v1345_v12 = vadd.f32 %v1313_v59, %v1241_v58  ;;  %v1225_v18 = vmul.f32 %v2823_v55, %v2997_v63  ;;  %2002 = vst [vmem:[%s2953_s11 + $0x20] sm:$0xff] %v1927_v11   ;;  %v1862_v48 = vunpack.c.l.bf16 %v3010_v49  ;;  %v3024_v58 = vld [vmem:[%s2617_s23 + $0x70] sm:$0xff]  }
 0x2f6   : > { %v1213_v38 = vmul.f32 %v2806_v40, %v3002_v3  ;;  %v1011_v50 = vpop.permute.xlu0 %1010  ;;  %v950_v57 = vpop.permute.xlu1 %949 }
 0x2f7   : > { %v1912_v25 = vpack.c.bf16 %v1346_v5, %v1345_v12  ;;  %v1257_v28 = vsub.f32 %v1878_v13, %v1225_v18  ;;  %v3017_v41 = vmul.f32 %v1891_v37, %v1011_v50  ;;  %v3020_v44 = vmul.f32 %v1866_v42, %v950_v57 }
 0x2f8   : > { %v1245_v23 = vsub.f32 %v1854_v27, %v1213_v38  ;;  %v1336_v12 = vmul.f32 %v2849_v0, %v1011_v50  ;;  %v1899_v38 = vunpack.c.h.bf16 %v3024_v58 }
 0x2f9   : > { %3299 = vst [vmem:[#allocation18_spill] sm:$0xff] %v3017_v41  ;;  %1999 = vst [vmem:[%s2953_s11 + $0x8] sm:$0xff] %v1912_v25   ;;  %v3027_v59 = vadd.f32 %v1329_v26, %v1257_v28  ;;  %v1232_v5 = vmul.f32 %v2852_v14, %v3017_v41  ;;  %v1219_v27 = vmul.f32 %v2815_v47, %v3020_v44  ;;  %v3040_v25 = vld [vmem:[%s2617_s23 + $0x68] sm:$0xff]  }
 0x2fa   : > { %v3031_v13 = vadd.f32 %v1317_v43, %v1245_v23  ;;  %v996_v46 = vpop.permute.xlu0 %995  ;;  %v939_v11 = vpop.permute.xlu1 %938  ;;  %3302 = vst [vmem:[#allocation21_spill] sm:$0xff] %v3040_v25  ;;  %v1323_v26 = vmul.f32 %v2812_v45, %v950_v57  ;;  %v1875_v43 = vunpack.c.h.bf16 %v2900_v34  ;;  %v1855_v34 = vunpack.c.h.bf16 %v2973_v54 }
 0x2fb   : > { %3300 = vst [vmem:[#allocation19_spill] sm:$0xff] %v3027_v59  ;;  %v1264_v51 = vsub.f32 %v1891_v37, %v1232_v5  ;;  %v3036_v18 = vmul.f32 %v1886_v16, %v996_v46  ;;  %v1251_v28 = vsub.f32 %v1866_v42, %v1219_v27  ;;  %v3043_v23 = vmul.f32 %v1862_v48, %v939_v11 }
 0x2fc   : > { %v1894_v42 = vunpack.c.l.bf16 %v3040_v25  ;;  %v1333_v57 = vmul.f32 %v2842_v8, %v996_v46 }
 0x2fd   : > { %3301 = vst [vmem:[#allocation20_spill] sm:$0xff] %v3036_v18  ;;  %v3046_v59 = vadd.f32 %v1336_v12, %v1264_v51  ;;  %v1229_v37 = vmul.f32 %v2845_v9, %v3036_v18  ;;  %v1355_v50 = vadd.f32 %v1323_v26, %v1251_v28  ;;  %v1217_v5 = vmul.f32 %v2838_v1, %v3043_v23  ;;  %v3058_v51 = vld [vmem:[%s2617_s23 + $0x78] sm:$0xff]   ;;  %s1540_s23 = sand.u32 1, %s2526_s17  }
 0x2fe   : > { %v1030_v41 = vpop.permute.xlu0 %1029  ;;  %v973_v63 = vpop.permute.xlu1 %972  ;;  %v1321_v26 = vmul.f32 %v2834_v61, %v939_v11  ;;  %v1903_v21 = vunpack.c.h.bf16 %v3058_v51  ;;  %s3191_s17 = scalar_lea.sflag [#allocation7], %s1540_s23 }
 0x2ff   : > { %v1261_v27 = vsub.f32 %v1886_v16, %v1229_v37  ;;  %v3054_v33 = vmul.f32 %v1899_v38, %v1030_v41  ;;  %v1937_v12 = vpack.c.bf16 %v2931_v15, %v1355_v50  ;;  %v1249_v28 = vsub.f32 %v1862_v48, %v1217_v5 }
 0x300   : > { %v3062_v18 = vmul.f32 %v1875_v43, %v973_v63  ;;  %v1902_v15 = vunpack.c.l.bf16 %v3058_v51  ;;  %v1340_v11 = vmul.f32 %v2856_v19, %v1030_v41 }
 0x301   : > { %v3064_v2 = vadd.f32 %v1333_v57, %v1261_v27  ;;  %v1236_v16 = vmul.f32 %v2859_v20, %v3054_v33  ;;  %2004 = vst [vmem:[%s2953_s11 + $0x30] sm:$0xff] %v1937_v12   ;;  %v3069_v46 = vadd.f32 %v1321_v26, %v1249_v28  ;;  %v1328_v57 = vmul.f32 %v2820_v53, %v973_v63 }
 0x302   : > { %v1224_v54 = vmul.f32 %v2823_v55, %v3062_v18  ;;  %v1015_v37 = vpop.permute.xlu0 %1014  ;;  %v924_v25 = vpop.permute.xlu1 %923  ;;  %v1882_v12 = vunpack.c.l.bf16 %v2943_v30 }
 0x303   : > { %3303 = vst [vmem:[#allocation22_spill] sm:$0xff] %v3064_v2  ;;  %v1268_v48 = vsub.f32 %v1899_v38, %v1236_v16  ;;  %v3075_v50 = vmul.f32 %v1894_v42, %v1015_v37  ;;  %v1046_v5 = vmul.f32 %v1855_v34, %v924_v25  ;;  %v1337_v38 = vmul.f32 %v2849_v0, %v1015_v37 }
 0x304   : > { %v1256_v27 = vsub.f32 %v1875_v43, %v1224_v54  ;;  %v1318_v63 = vmul.f32 %v2800_v36, %v924_v25 }
 0x305   : > { %3304 = vst [vmem:[#allocation23_spill] sm:$0xff] %v3075_v50  ;;  %v3079_v28 = vadd.f32 %v1340_v11, %v1268_v48  ;;  %v1233_v26 = vmul.f32 %v2852_v14, %v3075_v50  ;;  %v1214_v2 = vmul.f32 %v2806_v40, %v1046_v5  ;;  %v1863_v40 = vunpack.c.h.bf16 %v3010_v49 }
 0x306   : > { %v1360_v55 = vadd.f32 %v1328_v57, %v1256_v27  ;;  %v1034_v41 = vpop.permute.xlu0 %1033  ;;  %v988_v16 = vpop.permute.xlu1 %987 }
 0x307   : > { %v1265_v43 = vsub.f32 %v1894_v42, %v1233_v26  ;;  %v1246_v54 = vsub.f32 %v1855_v34, %v1214_v2  ;;  %v3087_v30 = vmul.f32 %v1902_v15, %v1034_v41  ;;  %v3090_v11 = vmul.f32 %v1882_v12, %v988_v16 }
 0x308   : > { %v1947_v48 = vpack.c.bf16 %v1360_v55, %v2947_v39  ;;  %v1890_v42 = vunpack.c.l.bf16 %v2984_v24  ;;  %v1341_v49 = vmul.f32 %v2856_v19, %v1034_v41  ;;  %v1331_v57 = vmul.f32 %v2842_v8, %v988_v16 }
 0x309   : > { %v3093_v50 = vadd.f32 %v1337_v38, %v1265_v43  ;;  %v1350_v27 = vadd.f32 %v1318_v63, %v1246_v54  ;;  %v1237_v37 = vmul.f32 %v2859_v20, %v3087_v30  ;;  %v1227_v2 = vmul.f32 %v2845_v9, %v3090_v11 }
 0x30a   : > { %2006 = vst [vmem:[%s2953_s11 + $0x40] sm:$0xff] %v1947_v48   ;;  %v1038_v36 = vpop.permute.xlu0 %1037  ;;  %v943_v25 = vpop.permute.xlu1 %942  ;;  %v1871_v38 = vunpack.c.h.bf16 %v2928_v10  ;;  %v1071_v43 = vadd.f32 %v2914_v56, %v2896_v32  ;;  %v1080_v54 = vadd.f32 %v2925_v7, %v2894_v31 }
 0x30b   : > { %v1922_v55 = vpack.c.bf16 %v1350_v27, %v3031_v13  ;;  %v1269_v39 = vsub.f32 %v1902_v15, %v1237_v37  ;;  %v3103_v34 = vmul.f32 %v1903_v21, %v1038_v36  ;;  %v1259_v51 = vsub.f32 %v1882_v12, %v1227_v2 }
 0x30c   : > { %v1050_v26 = vmul.f32 %v1863_v40, %v943_v25  ;;  %v1089_v15 = vadd.f32 %v2967_v4, %v2945_v35  ;;  %v1098_v12 = vadd.f32 %v2909_v52, %v3020_v44  ;;  %v1072_v32 = vadd.f32 %v1071_v43, %v2981_v22 }
 0x30d   : > { %2001 = vst [vmem:[%s2953_s11 + $0x18] sm:$0xff] %v1922_v55   ;;  %v1373_v24 = vadd.f32 %v1341_v49, %v1269_v39  ;;  %v1238_v13 = vmul.f32 %v2859_v20, %v3103_v34  ;;  %v1363_v41 = vadd.f32 %v1331_v57, %v1259_v51  ;;  %v1342_v31 = vmul.f32 %v2856_v19, %v1038_v36 }
 0x30e   : > { %v1218_v10 = vmul.f32 %v2838_v1, %v1050_v26  ;;  %v1007_v16 = vpop.permute.xlu1 %1006  ;;  %v1081_v63 = vadd.f32 %v1080_v54, %v3002_v3  ;;  %v1322_v35 = vmul.f32 %v2834_v61, %v943_v25  ;;  %v1898_v1 = vunpack.c.l.bf16 %v3024_v58 }
 0x30f   : > { %v1270_v56 = vsub.f32 %v1903_v21, %v1238_v13  ;;  %v1063_v7 = vmul.f32 %v1890_v42, %v1007_v16  ;;  %v1957_v48 = vpack.c.bf16 %v3005_v17, %v1363_v41  ;;  %v1090_v44 = vadd.f32 %v1089_v15, %v3043_v23 }
 0x310   : > { %v1250_v27 = vsub.f32 %v1863_v40, %v1218_v10  ;;  %v1082_v22 = vadd.f32 %v1081_v63, %v1046_v5  ;;  %v1099_v37 = vadd.f32 %v1098_v12, %v2961_v60  ;;  %v1335_v40 = vmul.f32 %v2849_v0, %v1007_v16  ;;  %v3306_v12 = vld [vmem:[#allocation17_spill] sm:$0xff]  ;;  %v3307_v10 = vld [vmem:[#allocation15_spill] sm:$0xff] }
 0x311   : > { %v1374_v4 = vadd.f32 %v1342_v31, %v1270_v56  ;;  %v1231_v52 = vmul.f32 %v2852_v14, %v1063_v7  ;;  %2008 = vst [vmem:[%s2953_s11 + $0x50] sm:$0xff] %v1957_v48   ;;  %v1073_v36 = vadd.f32 %v1072_v32, %v2940_v29  ;;  %v1091_v25 = vadd.f32 %v1090_v44, %v1050_v26  ;;  %v3308_v56 = vld [vmem:[#allocation16_spill] sm:$0xff]  ;;  %v3309_v63 = vld [vmem:[#allocation21_spill] sm:$0xff] }
 0x312   : > { %v1354_v21 = vadd.f32 %v1322_v35, %v1250_v27  ;;  %v962_v3 = vpop.permute.xlu1 %961  ;;  %v1083_v39 = vrot.slane %v1082_v22, 4  ;;  %v1107_v29 = vadd.f32 %v3062_v18, %v2923_v6  ;;  %v1879_v26 = vunpack.c.h.bf16 %v2964_v62 }
 0x313   : > { %v1982_v2 = vpack.c.bf16 %v1374_v4, %v1373_v24  ;;  %v1263_v17 = vsub.f32 %v1890_v42, %v1231_v52  ;;  %v1054_v61 = vmul.f32 %v1871_v38, %v962_v3  ;;  %v1326_v51 = vmul.f32 %v2812_v45, %v962_v3  ;;  %v3310_v52 = vld [vmem:[#allocation18_spill] sm:$0xff]  ;;  %v3312_v3 = vld [vmem:[#allocation20_spill] sm:$0xff] }
 0x314   : > { %v1932_v55 = vpack.c.bf16 %v1354_v21, %v3069_v46  ;;  %v1074_v43 = vrot.slane %v1073_v36, 4  ;;  %v1092_v46 = vrot.slane %v1091_v25, 4  ;;  %v1887_v41 = vunpack.c.h.bf16 %v3306_v12 }
 0x315   : > { %2013 = vst [vmem:[%s2953_s11 + $0x78] sm:$0xff] %v1982_v2   ;;  %v1367_v58 = vadd.f32 %v1335_v40, %v1263_v17  ;;  %v1100_v23 = vadd.f32 %v1099_v37, %v1054_v61  ;;  %v1222_v5 = vmul.f32 %v2815_v47, %v1054_v61  ;;  %v1125_v44 = vadd.f32 %v3310_v52, %v1063_v7 }
 0x316   : > { %2003 = vst [vmem:[%s2953_s11 + $0x28] sm:$0xff] %v1932_v55   ;;  %v1026_v60 = vpop.permute.xlu1 %1025  ;;  %v1093_v32 = vadd.f32 %v1092_v46, %v1091_v25  ;;  %v1075_v48 = vadd.f32 %v1074_v43, %v1073_v36  ;;  %v3314_v46 = vld [vmem:[#allocation19_spill] sm:$0xff] }
 0x317   : > { %v1967_v49 = vpack.c.bf16 %v3046_v59, %v1367_v58  ;;  %v1254_v42 = vsub.f32 %v1871_v38, %v1222_v5  ;;  %v1067_v57 = vmul.f32 %v1898_v1, %v1026_v60  ;;  %v1101_v54 = vrot.slane %v1100_v23, 4  ;;  %v3305_v38 = vld [vmem:[#allocation14_spill] sm:$0xff] }
 0x318   : > { %v1084_v59 = vadd.f32 %v1083_v39, %v1082_v22  ;;  %v1116_v45 = vadd.f32 %v3305_v38, %v3090_v11  ;;  %v1339_v16 = vmul.f32 %v2856_v19, %v1026_v60  ;;  %v1094_v40 = vrot.slane %v1093_v32, 2  ;;  %v3313_v60 = vld [vmem:[#allocation23_spill] sm:$0xff] }
 0x319   : > { %2010 = vst [vmem:[%s2953_s11 + $0x60] sm:$0xff] %v1967_v49   ;;  %v1358_v24 = vadd.f32 %v1326_v51, %v1254_v42  ;;  %v1134_v47 = vadd.f32 %v3054_v33, %v1067_v57  ;;  %v1235_v13 = vmul.f32 %v2859_v20, %v1067_v57  ;;  %v1108_v33 = vadd.f32 %v1107_v29, %v3308_v56 }
 0x31a   : > { %v981_v15 = vpop.permute.xlu1 %980  ;;  %v1895_v20 = vunpack.c.h.bf16 %v3309_v63  ;;  %v1102_v27 = vadd.f32 %v1101_v54, %v1100_v23  ;;  %v1085_v4 = vrot.slane %v1084_v59, 2  ;;  %v1117_v2 = vadd.f32 %v1116_v45, %v3312_v3 }
 0x31b   : > { %v1942_v6 = vpack.c.bf16 %v1358_v24, %v3307_v10  ;;  %v1135_v18 = vadd.f32 %v1134_v47, %v3087_v30  ;;  %v1267_v62 = vsub.f32 %v1898_v1, %v1235_v13  ;;  %v1058_v31 = vmul.f32 %v1879_v26, %v981_v15  ;;  %v3311_v1 = vld [vmem:[#allocation13_spill] sm:$0xff]  ;;  %v3315_v10 = vld [vmem:[#allocation22_spill] sm:$0xff] }
 0x31c   : > { %v1076_v25 = vrot.slane %v1075_v48, 2  ;;  %v1103_v55 = vrot.slane %v1102_v27, 2  ;;  %v1086_v23 = vadd.f32 %v1085_v4, %v1084_v59  ;;  %v1095_v29 = vadd.f32 %v1094_v40, %v1093_v32 }
 0x31d   : > { %2005 = vst [vmem:[%s2953_s11 + $0x38] sm:$0xff] %v1942_v6   ;;  %v1136_v11 = vadd.f32 %v1135_v18, %v3103_v34  ;;  %v1371_v35 = vadd.f32 %v1339_v16, %v1267_v62  ;;  %v1109_v30 = vadd.f32 %v1108_v33, %v1058_v31  ;;  %v1226_v22 = vmul.f32 %v3311_v1, %v1058_v31 }
 0x31e   : > { %v1000_v19 = vpop.permute.xlu1 %999  ;;  %v1330_v34 = vmul.f32 %v2820_v53, %v981_v15  ;;  %v1077_v24 = vadd.f32 %v1076_v25, %v1075_v48  ;;  %v1104_v47 = vadd.f32 %v1103_v55, %v1102_v27  ;;  %v1087_v15 = vrot.slane %v1086_v23, 1 }
 0x31f   : > { %v1137_v21 = vrot.slane %v1136_v11, 4  ;;  %v1977_v37 = vpack.c.bf16 %v3079_v28, %v1371_v35  ;;  %v1062_v17 = vmul.f32 %v1887_v41, %v1000_v19  ;;  %v1110_v61 = vrot.slane %v1109_v30, 4 }
 0x320   : > { %v1258_v36 = vsub.f32 %v1879_v26, %v1226_v22  ;;  %v1126_v28 = vadd.f32 %v1125_v44, %v3313_v60  ;;  %v1334_v43 = vmul.f32 %v2842_v8, %v1000_v19  ;;  %v1096_v6 = vrot.slane %v1095_v29, 1 }
 0x321   : > { %2012 = vst [vmem:[%s2953_s11 + $0x70] sm:$0xff] %v1977_v37   ;;  %v1118_v58 = vadd.f32 %v1117_v2, %v1062_v17  ;;  %v1230_v7 = vmul.f32 %v2845_v9, %v1062_v17  ;;  %v1111_v5 = vadd.f32 %v1110_v61, %v1109_v30  ;;  %v1138_v42 = vadd.f32 %v1137_v21, %v1136_v11 }
 0x322   : > { %v1362_v39 = vadd.f32 %v1330_v34, %v1258_v36  ;;  %v1019_v49 = vpop.permute.xlu1 %1018  ;;  %v1078_v32 = vrot.slane %v1077_v24, 1  ;;  %v1105_v56 = vrot.slane %v1104_v47, 1  ;;  %v1088_v27 = vadd.f32 %v1087_v15, %v1086_v23 }
 0x323   : > { %v1119_v51 = vrot.slane %v1118_v58, 4  ;;  %v1262_v57 = vsub.f32 %v1887_v41, %v1230_v7  ;;  %v1112_v53 = vrot.slane %v1111_v5, 2  ;;  %v1066_v54 = vmul.f32 %v1895_v20, %v1019_v49 }
 0x324   : > { %v1952_v26 = vpack.c.bf16 %v1362_v39, %v3314_v46  ;;  %v1139_v12 = vrot.slane %v1138_v42, 2  ;;  %v1338_v16 = vmul.f32 %v2849_v0, %v1019_v49  ;;  %v1097_v35 = vadd.f32 %v1096_v6, %v1095_v29 }
 0x325   : > { %v1120_v9 = vadd.f32 %v1119_v51, %v1118_v58  ;;  %v1366_v13 = vadd.f32 %v1334_v43, %v1262_v57  ;;  %v1113_v59 = vadd.f32 %v1112_v53, %v1111_v5  ;;  %v1127_v38 = vadd.f32 %v1126_v28, %v1066_v54 }
 0x326   : > { %2007 = vst [vmem:[%s2953_s11 + $0x48] sm:$0xff] %v1952_v26   ;;  %v1234_v45 = vmul.f32 %v2852_v14, %v1066_v54  ;;  %v1140_v14 = vadd.f32 %v1139_v12, %v1138_v42  ;;  %v1106_v0 = vadd.f32 %v1105_v56, %v1104_v47 }
 0x327   : > { %v1121_v41 = vrot.slane %v1120_v9, 2  ;;  %v1962_v8 = vpack.c.bf16 %v1366_v13, %v3315_v10  ;;  %v1128_v18 = vrot.slane %v1127_v38, 4  ;;  %v1114_v31 = vrot.slane %v1113_v59, 1 }
 0x328   : > { %v1266_v62 = vsub.f32 %v1895_v20, %v1234_v45  ;;  %v1079_v20 = vadd.f32 %v1078_v32, %v1077_v24  ;;  %v1141_v22 = vrot.slane %v1140_v14, 1 }
 0x329   : > { %v1122_v33 = vadd.f32 %v1121_v41, %v1120_v9  ;;  %2009 = vst [vmem:[%s2953_s11 + $0x58] sm:$0xff] %v1962_v8   ;;  %v1129_v63 = vadd.f32 %v1128_v18, %v1127_v38  ;;  %v1115_v44 = vadd.f32 %v1114_v31, %v1113_v59 }
 0x32a   : > { %v1370_v48 = vadd.f32 %v1338_v16, %v1266_v62  ;;  %v1152_v1 = vsel %vm1151_vm3, %v1088_v27, %v1079_v20  ;;  %v1142_v17 = vadd.f32 %v1141_v22, %v1140_v14 }
 0x32b   : > { %v1123_v11 = vrot.slane %v1122_v33, 1  ;;  %v1130_v4 = vrot.slane %v1129_v63, 2  ;;  %v1154_v21 = vsel %vm1153_vm4, %v1097_v35, %v1152_v1 }
 0x32c   : > { %v1972_v52 = vpack.c.bf16 %v1370_v48, %v3093_v50  ;;  %v1156_v50 = vsel %vm1155_vm5, %v1106_v0, %v1154_v21 }
 0x32d   : > { %v1131_v30 = vadd.f32 %v1130_v4, %v1129_v63  ;;  %v1124_v19 = vadd.f32 %v1123_v11, %v1122_v33  ;;  %v1158_v3 = vsel %vm1157_vm6, %v1115_v44, %v1156_v50 }
 0x32e   : > { %2011 = vst [vmem:[%s2953_s11 + $0x68] sm:$0xff] %v1972_v52   ;;  %s2446_s11 = smov [#allocation6]  }
 0x32f   : > { %v1132_v37 = vrot.slane %v1131_v30, 1  ;;  %v1160_v40 = vsel %vm1159_vm7, %v1124_v19, %v1158_v3  ;;  %s2342_s27 = sshll.u32 %s2446_s11, 4  ;;  %s2343_s27 = int_to_ptr.vmem [resolvable:$false] %s2342_s27 }
 0x330   : > { %s2344_s21 = scalar_lea.vmem %s2343_s27, 256  ;;  %p2345_p4 = scmp.lt.s32.totalorder %s3182_s29, %s2343_s27 }
 0x331   : > { %v1133_v2 = vadd.f32 %v1132_v37, %v1131_v30  ;;  %p2346_p5 = scmp.lt.s32.totalorder %s2344_s21, %s2338_s12 }
 0x333   : > { %v1162_v61 = vsel %vm1161_vm8, %v1133_v2, %v1160_v40  ;;  %p2347_p7 = por %p2346_p5, %p2345_p4 }
 0x334   : > { %v1164_v36 = vsel %vm1163_vm9, %v1142_v17, %v1162_v61 }
 0x335   : > { %1166 = vst [vmem:[%s415_s30] sm:$0xff] %v1164_v36  ;;  %p2348_p9 = pnand %p2347_p7, %p2341_p2 }
 0x337   : > { %2351 = shalt.err (!%p2348_p9)
}
 0x338   : > { %s2352_s23 = scalar_lea.hbm %s3180_s0, 128  ;;  %s2356_s24 = scalar_lea.hbm %s3266_s9, 256 }
 0x339   : > { %p2353_p1 = scmp.ne.s32.totalorder %s3180_s0, %s2352_s23  ;;  %p2357_p11 = scmp.lt.u32.totalorder %s3180_s0, %s3266_s9 }
 0x33a   : > { %p2358_p13 = scmp.lt.u32.totalorder %s2356_s24, %s2352_s23  ;;  %p2360_p10 = scmp.lt.u32.totalorder %s2352_s23, %s3180_s0 }
 0x33b   : > { %p2354_p3 = pnand %p2353_p1, %p3293_p12 }
 0x33c   : > { %p2359_p8 = por %p2358_p13, %p2357_p11 }
 0x33d   : > { %p2355_p6 = pneg %p2354_p3 }
 0x33e   : > { %p2361_p0 = por %p2360_p10, %p2359_p8 }
 0x340   : > { %p2362_p2 = pnand %p2361_p0, %p2355_p6 }
 0x342   : > { %2365 = shalt.err (!%p2362_p2)
}
 0x343   : > { %2209 = dma.vmem_to_hbm [thread:$0]  (%p3293_p12), %s3182_s29, 128, %s3180_s0, %s3191_s17  }
 0x344   : > { %s2366_s12 = scalar_lea.vmem %s3189_s1, 2048  ;;  %s2447_s11 = smov [#allocation8]  }
 0x345   : > { %p2367_p4 = scmp.ne.s32.totalorder %s3189_s1, %s2366_s12  ;;  %s2370_s27 = sshll.u32 %s2447_s11, 4  ;;  %s2371_s27 = int_to_ptr.vmem [resolvable:$false] %s2370_s27 }
 0x346   : > { %s2372_s21 = scalar_lea.vmem %s2371_s27, 4096  ;;  %p2373_p9 = scmp.lt.s32.totalorder %s3189_s1, %s2371_s27 }
 0x347   : > { %p2368_p5 = pnand %p2367_p4, %p3293_p12  ;;  %p2374_p1 = scmp.lt.s32.totalorder %s2372_s21, %s2366_s12 }
 0x349   : > { %p2369_p7 = pneg %p2368_p5  ;;  %p2375_p3 = por %p2374_p1, %p2373_p9 }
 0x34b   : > { %p2376_p6 = pnand %p2375_p3, %p2369_p7 }
 0x34d   : > { %2379 = shalt.err (!%p2376_p6)
}
 0x34e   : > { %s2380_s29 = scalar_lea.hbm %s3187_s28, 2048  ;;  %s2384_s30 = scalar_lea.hbm %s3267_s10, 4096 }
 0x34f   : > { %p2381_p11 = scmp.ne.s32.totalorder %s3187_s28, %s2380_s29  ;;  %p2385_p10 = scmp.lt.u32.totalorder %s3187_s28, %s3267_s10 }
 0x350   : > { %p2386_p0 = scmp.lt.u32.totalorder %s2384_s30, %s2380_s29  ;;  %p2388_p4 = scmp.lt.u32.totalorder %s2380_s29, %s3187_s28 }
 0x351   : > { %p2382_p13 = pnand %p2381_p11, %p3293_p12 }
 0x352   : > { %p2387_p2 = por %p2386_p0, %p2385_p10 }
 0x353   : > { %p2383_p8 = pneg %p2382_p13 }
 0x354   : > { %p2389_p5 = por %p2388_p4, %p2387_p2 }
 0x356   : > { %p2390_p7 = pnand %p2389_p5, %p2383_p8 }
 0x358   : > { %2393 = shalt.err (!%p2390_p7)
}
 0x359   : > { %s2448_s20 = smov 64   ;;  %s2449_s22 = smov 4  }
 0x35a   : > { %2210 = dma.vmem_to_hbm [thread:$0]  (%p3293_p12), %s3189_s1, 2048, %s3187_s28, %s3191_s17, %s2448_s20, %s2448_s20, %s2449_s22  }
 0x35b PF: > { %s1601_s12 = sand.u32 1, %s2424_s13   ;;  %p3317_p9 = scmp.ne.s32.totalorder %s3287_s26, 0 }
 0x35c   : > { %p3318_p1 = scmp.ge.s32.totalorder %s2436_s16, 2  ;;  %s1602_s11 = scalar_lea.sflag [#allocation4], %s1601_s12 }
 0x35e   : > { %p2219_p3 = pnand %p3318_p1, %p3317_p9 }
 0x360   : > { %2415 = dma.done.wait (!%p2219_p3), %s1602_s11, 128  }
 0x361   : > { %2417 = vsyncadd (!%p2219_p3), %s1602_s11, 4294967168  ;;  %s3319_s27 = sadd.s32 4294967294, %s2436_s16  }
 0x362   : > { %s1610_s21 = sand.u32 1, %s3319_s27  }
 0x363   : > { %s1611_s29 = scalar_lea.sflag [#allocation7], %s1610_s21 }
 0x364   : > { %2419 = dma.done.wait (!%p2219_p3), %s1611_s29, 2176  }
 0x365   : > { %2421 = vsyncadd (!%p2219_p3), %s1611_s29, 4294965120  ;;  %s3320_s25 = sld [smem:[#allocation12_spill]]  ;;  %p27_p12 = scmp.ge.s32.totalorder %s2530_s19, 4  }
 0x366   : > { %s3321_s13 = smov %s2428_s14  ;;  %s3322_s14 = smov %s2432_s15 }
 0x367   : > { %s3324_s16 = smov %s2530_s19  ;;  %29 = sbr.rel (!%p27_p12) target bundleno = 10 (0xa), region = 135 }
 0x36b   : > { %s3323_s15 = smov %s3320_s25 }
 0x36e   :  { %1625 = vsyncpa [#allocation3], 1 }
 0x36f   :  { %1627 = vsyncpa [#allocation3 + $0x1], 1 }
 0x370   :  { %1628 = vsyncpa [#allocation4], 1 }
 0x371   :  { %1630 = vsyncpa [#allocation4 + $0x1], 1 }
 0x372   :  { %1631 = vsyncpa [#allocation7], 1 }
 0x373   :  { %1633 = vsyncpa [#allocation7 + $0x1], 1 }

</bundles_post_ra>
